<compile_context>
chip_gen: v5e
topology: v5e:2x2
jax: 0.10.0
libtpu: 0.0.40
codegen_flags: <defaults>
</compile_context>

<pallas_src>
import jax
import jax.numpy as jnp
from jax.experimental import pallas as pl
from jax.experimental.pallas import tpu as pltpu

_LANE = 128
_SUBLANE = 8
_MIN_PALLAS_ELEMS = _SUBLANE * _LANE          # ~1 vreg of 32-bit elems
_DEFAULT_TILE_BYTES = 2 * 1024 * 1024         # per-tile cap (x4 live w/ dbl-buffer in+out)
_SINGLE_BLOCK_CAP = 8 * 1024 * 1024           # max bytes for an un-tiled single block


def _copy_kernel(x_ref, o_ref):
    # do_nothing: elementwise pass-through of one VMEM tile (pure vld -> vst).
    o_ref[...] = x_ref[...]


def _sublane_multiple(itemsize):
    """Row granularity so sub-32-bit dtypes stay sublane-packed (bf16 x16, int8 x32)."""
    return _SUBLANE * max(1, 4 // max(1, itemsize))


def _choose_slab(n, itemsize):
    """Lane-dense (rows, cols) factorization of n elements, or None."""
    if n % _LANE != 0:
        return None
    row_mult = _sublane_multiple(itemsize)
    # Prefer wide lane-dense columns with rows on the dtype's sublane multiple
    # (so large arrays can be tiled into a multi-block grid of unmasked tiles).
    for cols in (1024, 512, 256, 128):
        if n % cols == 0 and (n // cols) % row_mult == 0:
            return n // cols, cols
    # Fall back to any lane-dense factorization (single-block path).
    for cols in (4096, 2048, 1024, 512, 256, 128):
        if n % cols == 0:
            return n // cols, cols
    return None


def _pick_tile_rows(rows, row_bytes, itemsize, max_tile_bytes):
    """Largest sublane-aligned divisor of `rows` whose tile fits max_tile_bytes."""
    row_mult = _sublane_multiple(itemsize)
    cap = max(1, max_tile_bytes // max(1, row_bytes))
    best = None
    t = row_mult
    limit = min(rows, cap)
    while t <= limit:
        if rows % t == 0:
            best = t
        t += row_mult
    return best


def _pallas_identity(x, *, max_tile_bytes=_DEFAULT_TILE_BYTES):
    """Identity (do_nothing). Pallas copy only where it cannot hurt."""
    x = jnp.asarray(x)
    n = x.size

    # Fast path: identity needs no kernel for tiny / lane-awkward tensors.
    if n < _MIN_PALLAS_ELEMS:
        return x
    itemsize = jnp.dtype(x.dtype).itemsize
    slab = _choose_slab(n, itemsize)
    if slab is None:
        return x
    rows, cols = slab

    x2 = x.reshape(rows, cols)                     # lane-dense slab
    row_bytes = cols * itemsize
    total_bytes = rows * row_bytes

    if total_bytes <= max_tile_bytes:
        tile_rows = rows                           # single full-array block
    else:
        tile_rows = _pick_tile_rows(rows, row_bytes, itemsize, max_tile_bytes)
        if tile_rows is None:
            tile_rows = rows
    if tile_rows == rows and total_bytes > _SINGLE_BLOCK_CAP:
        # Can't tile into sublane-aligned blocks and the whole slab would blow
        # the VMEM budget: identity semantics let us simply pass it through.
        return x

    grid = (rows // tile_rows,)
    # Only alias when the reshape definitely produced a fresh intermediate
    # buffer (shape changed); never donate the caller's own array.
    aliases = {0: 0} if x2.shape != x.shape else {}

    out = pl.pallas_call(
        _copy_kernel,
        out_shape=jax.ShapeDtypeStruct((rows, cols), x2.dtype),
        grid=grid,
        in_specs=[pl.BlockSpec((tile_rows, cols), lambda i: (i, 0))],
        out_specs=pl.BlockSpec((tile_rows, cols), lambda i: (i, 0)),
        input_output_aliases=aliases,
        cost_estimate=pl.CostEstimate(
            flops=0, transcendentals=0, bytes_accessed=int(2 * x2.nbytes)),
        compiler_params=pltpu.CompilerParams(
            dimension_semantics=("parallel",),     # shard copy grid over v7x's 2 TCs
            vmem_limit_bytes=32 * 1024 * 1024),
    )(x2)
    return out.reshape(x.shape)


def _do_nothing(*args):
    """`do_nothing`: identity on each positional arg (Pallas-backed where useful)."""
    outs = tuple(_pallas_identity(a) for a in args)
    if len(outs) == 1:
        return outs[0]
    return outs


class CombineTransforms:
    """JAX/Pallas port of the PyTorch CombineTransforms module."""

    def __init__(self, seq_transform=None, label_transform=None):
        self.seq_transform = _do_nothing
        if seq_transform is not None:
            self.seq_transform = seq_transform
        self.label_transform = _do_nothing
        if label_transform is not None:
            self.label_transform = label_transform

    def __call__(self, seqs, labels):
        # labels is a tuple, unpacked into label_transform — same as PyTorch forward.
        return (self.seq_transform(seqs), self.label_transform(*labels))


if __name__ == "__main__":
    key = jax.random.PRNGKey(0)
    k_seq, k_lab0, k_lab1, k_big, k_bf16 = jax.random.split(key, 5)

    # Small shapes consistent with sequence-model data:
    #   seqs:   (batch=2, channels=4, length=256)  float32
    #   labels: tuple of (batch=2, length=256) float32 and (batch=2,) int32
    seqs = jax.random.normal(k_seq, (2, 4, 256), dtype=jnp.float32)
    labels = (
        jax.random.normal(k_lab0, (2, 256), dtype=jnp.float32),
        jax.random.randint(k_lab1, (2,), 0, 10, dtype=jnp.int32),
    )

    # No trainable parameters in this module (deterministic by construction).
    module = CombineTransforms()  # default: both transforms are do_nothing

    out_seqs, out_labels = module(seqs, labels)
    jax.block_until_ready(out_seqs)
    jax.block_until_ready(out_labels)

    # Verify exact identity semantics (shape, dtype, values).
    assert out_seqs.shape == seqs.shape and out_seqs.dtype == seqs.dtype
    assert jnp.array_equal(out_seqs, seqs)
    assert isinstance(out_labels, tuple) and len(out_labels) == len(labels)
    for got, ref in zip(out_labels, labels):
        assert got.shape == ref.shape and got.dtype == ref.dtype
        assert jnp.array_equal(got, ref)

    # Exercise the tiled multi-block grid path of the Pallas copy directly:
    # (256, 128) f32 -> lane-dense (32, 1024) slab, 32 KiB tile cap
    # -> grid=(4,) of (8, 1024) blocks, sharded across cores.
    x_big = jax.random.normal(k_big, (256, 128), dtype=jnp.float32)
    y_big = _pallas_identity(x_big, max_tile_bytes=32 * 1024)
    jax.block_until_ready(y_big)
    assert y_big.shape == x_big.shape and y_big.dtype == x_big.dtype
    assert jnp.array_equal(y_big, x_big)

    # Exercise the sub-32-bit (sublane-packed) path: bf16 rows tile on x16.
    x_bf16 = jax.random.normal(k_bf16, (64, 256), dtype=jnp.bfloat16)
    y_bf16 = _pallas_identity(x_bf16, max_tile_bytes=16 * 1024)
    jax.block_until_ready(y_bf16)
    assert y_bf16.shape == x_bf16.shape and y_bf16.dtype == x_bf16.dtype
    assert jnp.array_equal(y_bf16, x_bf16)

    print("KERNEL_OK")
</pallas_src>

<mosaic_0001>
module attributes {stable_mosaic.version = 11 : i64} {
  func.func @_copy_kernel(%arg0: i32, %arg1: memref<8x256xf32, #tpu.memory_space<vmem>>, %arg2: memref<8x256xf32, #tpu.memory_space<vmem>>) attributes {dimension_semantics = [#tpu.dimension_semantics<parallel>], iteration_bounds = array<i64: 1>, scalar_prefetch = 0 : i64, scratch_operands = 0 : i64, tpu.core_type = #tpu.core_type<tc>, window_params = [{transform_indices = @transform_0, window_bounds = array<i64: 8, 256>}, {transform_indices = @transform_1, window_bounds = array<i64: 8, 256>}]} {
    %c0 = arith.constant 0 : index
    %c0_0 = arith.constant 0 : index
    %0 = vector.load %arg1[%c0, %c0_0] : memref<8x256xf32, #tpu.memory_space<vmem>>, vector<8x256xf32>
    %c0_1 = arith.constant 0 : index
    %c0_2 = arith.constant 0 : index
    %1 = vector.load %arg2[%c0_1, %c0_2] : memref<8x256xf32, #tpu.memory_space<vmem>>, vector<8x256xf32>
    tpu.vector_store %arg2[%c0_1, %c0_2], %0 {strides = array<i32>} : memref<8x256xf32, #tpu.memory_space<vmem>>, vector<8x256xf32>,
    return
  }
  func.func @transform_0(%arg0: i32) -> (i32, i32) {
    %c0_i32 = arith.constant 0 : i32
    %c0_i32_0 = arith.constant 0 : i32
    return %arg0, %c0_i32 : i32, i32
  }
  func.func @transform_1(%arg0: i32) -> (i32, i32) {
    %c0_i32 = arith.constant 0 : i32
    %c0_i32_0 = arith.constant 0 : i32
    return %arg0, %c0_i32 : i32, i32
  }
}

</mosaic_0001>

<bundles_post_ra>
// kernel: tpu_custom_call.1
= control target key start
LH: loop header
LB: loop body
LE: loop exit
PB: predicated region body
PF: predicated region fallthrough
CT: control target
= control target key end

     0   :  { %6 = vsyncpa [#allocation3], 0  ;;  %s116_s0 = inlined_call_operand.hbm [shape: f32[8,256], index: 0, kind: input, shape index: {}, may-alias: {0,1}]   ;;  %s117_s1 = inlined_call_operand.hbm [shape: f32[8,256], index: 1, kind: output, shape index: {}, may-alias: {0,1}]  }
   0x1   :  { %7 = vsyncpa [#allocation4], 0  ;;  %s13_s8 = sshll.u32 %s116_s0, 4  ;;  %s98_s9 = smov [#allocation2]   ;;  %s14_s8 = int_to_ptr.hbm [resolvable:$true] %s13_s8 }
   0x2   :  { %s15_s10 = sshll.u32 %s98_s9, 4  ;;  %s16_s10 = int_to_ptr.vmem [resolvable:$true] %s15_s10 }
   0x3   :  { %18 = dma.hbm_to_vmem [thread:$0]  %s14_s8, 256, %s16_s10, [#allocation3]  }
   0x4   :  { %94 = dma.done.wait [#allocation3], 256  }
   0x5   :  { %95 = vsyncadd [#allocation3], 4294967040  ;;  %s99_s11 = smov [#allocation5]   ;;  %s34_s15 = sshll.u32 %s117_s1, 4  ;;  %v23_v0 = vld [vmem:[#allocation2] sm:$0xff]  ;;  %v24_v1 = vld [vmem:[#allocation2 + $0x8] sm:$0xff]  ;;  %s35_s15 = int_to_ptr.hbm [resolvable:$true] %s34_s15 }
   0x6   :  { %s32_s12 = sshll.u32 %s99_s11, 4  ;;  %25 = vst [vmem:[#allocation5] sm:$0xff] %v23_v0  ;;  %s33_s12 = int_to_ptr.vmem [resolvable:$true] %s32_s12 }
   0x7   :  { %26 = vst [vmem:[#allocation5 + $0x8] sm:$0xff] %v24_v1 }
   0x8   :  { %37 = dma.vmem_to_hbm [thread:$0]  %s33_s12, 256, %s35_s15, [#allocation4]  }
   0x9   :  { %96 = dma.done.wait [#allocation4], 256  }
   0xa   :  { %97 = vsyncadd [#allocation4], 4294967040 }
   0xb   :  { %42 = vsyncpa [#allocation3], 1 }
   0xc   :  { %43 = vsyncpa [#allocation4], 1 }

</bundles_post_ra>
